<compile_context>
chip_gen: v7x
topology: tpu7x:2x2x1
jax: 0.10.0
libtpu: 0.0.40
codegen_flags: <defaults>
</compile_context>

<pallas_src>
import jax
import jax.numpy as jnp
from jax import lax
from jax.experimental import pallas as pl
from jax.experimental.pallas import tpu as pltpu

IN_DIM = 512
HID_DIM = 100
OUT_DIM = 2
HID_PAD = 128   # 100 -> 128: one full lane width (zero-padded columns)
OUT_SUB = 8     # 2 -> 8: one sublane; output produced transposed as (8, B)


def _round_down(x, m):
    return (x // m) * m


def _choose_tb(B):
    """Batch tile: large enough to amortize per-grid-step overhead, and >= 2
    grid steps whenever possible so the 'parallel' batch axis can be sharded
    across both TensorCores on v7x."""
    if B <= 256:
        return B                        # single block; fine for small batches / 1-TC chips
    half = _round_down(B // 2, 128)     # multiple of 128 (lane-dense output tiles), grid >= 2
    return max(128, min(2048, half))


def _mlp_kernel(x_ref, w1_ref, b1_ref, w2t_ref, b2_ref, o_ref):
    # fc1: (TB, 512) @ (512, 128) + (1, 128), ReLU.  bf16 inputs, f32 accumulation.
    h = jnp.dot(x_ref[...], w1_ref[...], preferred_element_type=jnp.float32)
    h = jnp.maximum(h + b1_ref[...], 0.0)
    # fc2, transposed: (8, 128) x (TB, 128)^T -> (8, TB).  Stores are lane-dense
    # along the batch axis; padded rows (2..7) are zero weights/bias.
    out = lax.dot_general(w2t_ref[...], h.astype(w2t_ref.dtype),
                          (((1,), (1,)), ((), ())),
                          preferred_element_type=jnp.float32)
    o_ref[...] = (out + b2_ref[...]).astype(o_ref.dtype)


def pad_params(w1, b1, w2, b2, *, param_dtype=jnp.bfloat16):
    """Zero-pad & lay out params once:
         w1 (512, 100) -> (512, 128)              [param_dtype]
         b1 (1, 100)   -> (1, 128)                [f32]
         w2 (100, 2)   -> transposed (8, 128)     [param_dtype]
         b2 (1, 2)     -> (8, 1)                  [f32]
    """
    w1p = jnp.zeros((IN_DIM, HID_PAD), jnp.float32).at[:, :HID_DIM].set(w1)
    b1p = jnp.zeros((1, HID_PAD), jnp.float32).at[:, :HID_DIM].set(b1.reshape(1, HID_DIM))
    w2tp = jnp.zeros((OUT_SUB, HID_PAD), jnp.float32).at[:OUT_DIM, :HID_DIM].set(w2.T)
    b2p = jnp.zeros((OUT_SUB, 1), jnp.float32).at[:OUT_DIM, 0].set(b2.reshape(OUT_DIM))
    return w1p.astype(param_dtype), b1p, w2tp.astype(param_dtype), b2p


def domain_discriminator(x, w1p, b1p, w2tp, b2p, *, tb=None):
    """x: (B, 512). Padded params from pad_params(). Returns (B, 2) f32 logits."""
    B = x.shape[0]
    if tb is None:
        tb = _choose_tb(B)
    tb = min(tb, B)
    grid = (pl.cdiv(B, tb),)   # ragged last block handled by Pallas; no x padding/copy

    x = x.astype(w1p.dtype)    # bf16 feed (cast by XLA outside the kernel)

    bytes_in = jnp.dtype(w1p.dtype).itemsize
    cost = pl.CostEstimate(
        flops=2 * B * IN_DIM * HID_PAD + 2 * B * HID_PAD * OUT_SUB,
        transcendentals=0,
        bytes_accessed=(B * IN_DIM * bytes_in                       # x read
                        + (IN_DIM * HID_PAD + OUT_SUB * HID_PAD) * bytes_in  # weights
                        + (HID_PAD + OUT_SUB) * 4                   # biases
                        + OUT_SUB * B * 4),                         # transposed output
    )

    out_t = pl.pallas_call(
        _mlp_kernel,
        out_shape=jax.ShapeDtypeStruct((OUT_SUB, B), jnp.float32),
        grid=grid,
        in_specs=[
            pl.BlockSpec((tb, IN_DIM), lambda i: (i, 0)),        # streamed x tiles
            pl.BlockSpec((IN_DIM, HID_PAD), lambda i: (0, 0)),   # VMEM-resident weights
            pl.BlockSpec((1, HID_PAD), lambda i: (0, 0)),
            pl.BlockSpec((OUT_SUB, HID_PAD), lambda i: (0, 0)),
            pl.BlockSpec((OUT_SUB, 1), lambda i: (0, 0)),
        ],
        out_specs=pl.BlockSpec((OUT_SUB, tb), lambda i: (0, i)),
        compiler_params=pltpu.CompilerParams(
            dimension_semantics=("parallel",),   # megacore-shardable batch axis
        ),
        cost_estimate=cost,
    )(x, w1p, b1p, w2tp, b2p)

    # (8, B) -> (B, 2): drop padded logit rows; tiny transpose done by XLA.
    return out_t[:OUT_DIM, :].T


def init_params(key):
    """Deterministic init mimicking PyTorch nn.Linear default (uniform +-1/sqrt(fan_in))."""
    k1, k2, k3, k4 = jax.random.split(key, 4)
    bound1 = 1.0 / (IN_DIM ** 0.5)
    bound2 = 1.0 / (HID_DIM ** 0.5)
    w1 = jax.random.uniform(k1, (IN_DIM, HID_DIM), jnp.float32, -bound1, bound1)
    b1 = jax.random.uniform(k2, (1, HID_DIM), jnp.float32, -bound1, bound1)
    w2 = jax.random.uniform(k3, (HID_DIM, OUT_DIM), jnp.float32, -bound2, bound2)
    b2 = jax.random.uniform(k4, (1, OUT_DIM), jnp.float32, -bound2, bound2)
    return w1, b1, w2, b2


def reference(x, w1, b1, w2, b2):
    h = jnp.maximum(x @ w1 + b1, 0.0)
    return h @ w2 + b2


if __name__ == "__main__":
    key = jax.random.PRNGKey(0)
    kx, kx2, kp = jax.random.split(key, 3)
    w1, b1, w2, b2 = init_params(kp)
    w1p, b1p, w2tp, b2p = pad_params(w1, b1, w2, b2)

    # Small batch: single-block path.
    B = 8
    x = jax.random.normal(kx, (B, IN_DIM), jnp.float32)
    out = jax.block_until_ready(domain_discriminator(x, w1p, b1p, w2tp, b2p))
    ref = reference(x, w1, b1, w2, b2)
    assert out.shape == (B, OUT_DIM), out.shape
    assert jnp.allclose(out, ref, atol=2e-2, rtol=2e-2), \
        f"max err {jnp.max(jnp.abs(out - ref))}"

    # Multi-block path with a ragged last block (no padding copy of x).
    B2 = 260
    x2 = jax.random.normal(kx2, (B2, IN_DIM), jnp.float32)
    out2 = jax.block_until_ready(domain_discriminator(x2, w1p, b1p, w2tp, b2p))
    ref2 = reference(x2, w1, b1, w2, b2)
    assert out2.shape == (B2, OUT_DIM), out2.shape
    assert jnp.allclose(out2, ref2, atol=2e-2, rtol=2e-2), \
        f"max err {jnp.max(jnp.abs(out2 - ref2))}"

    print("KERNEL_OK")
</pallas_src>

<mosaic_0001>
module attributes {stable_mosaic.version = 11 : i64} {
  func.func @_mlp_kernel(%arg0: i32, %arg1: memref<8x512xbf16, #tpu.memory_space<vmem>>, %arg2: memref<512x128xbf16, #tpu.memory_space<vmem>>, %arg3: memref<1x128xf32, #tpu.memory_space<vmem>>, %arg4: memref<8x128xbf16, #tpu.memory_space<vmem>>, %arg5: memref<8x1xf32, #tpu.memory_space<vmem>>, %arg6: memref<8x8xf32, #tpu.memory_space<vmem>>) attributes {dimension_semantics = [#tpu.dimension_semantics<parallel>], iteration_bounds = array<i64: 1>, scalar_prefetch = 0 : i64, scratch_operands = 0 : i64, tpu.core_type = #tpu.core_type<tc>, window_params = [{transform_indices = @transform_0, window_bounds = array<i64: 8, 512>}, {pipeline_mode = #tpu.pipeline_mode<synchronous>, transform_indices = @transform_1, window_bounds = array<i64: 512, 128>}, {pipeline_mode = #tpu.pipeline_mode<synchronous>, transform_indices = @transform_2, window_bounds = array<i64: 1, 128>}, {pipeline_mode = #tpu.pipeline_mode<synchronous>, transform_indices = @transform_3, window_bounds = array<i64: 8, 128>}, {pipeline_mode = #tpu.pipeline_mode<synchronous>, transform_indices = @transform_4, window_bounds = array<i64: 8, 1>}, {transform_indices = @transform_5, window_bounds = array<i64: 8, 8>}]} {
    %c0 = arith.constant 0 : index
    %c0_0 = arith.constant 0 : index
    %0 = vector.load %arg1[%c0, %c0_0] : memref<8x512xbf16, #tpu.memory_space<vmem>>, vector<8x512xbf16>
    %c0_1 = arith.constant 0 : index
    %c0_2 = arith.constant 0 : index
    %1 = vector.load %arg2[%c0_1, %c0_2] : memref<512x128xbf16, #tpu.memory_space<vmem>>, vector<512x128xbf16>
    %cst = arith.constant dense<0.000000e+00> : vector<8x128xf32>
    %2 = tpu.matmul %0, %1, %cst {dimension_numbers = #tpu.dot_dimension_numbers<[1], [0], [0], [1], [0, 0, 1, 1], [], []>} : vector<8x512xbf16>, vector<512x128xbf16>, vector<8x128xf32> -> vector<8x128xf32>
    %c0_3 = arith.constant 0 : index
    %c0_4 = arith.constant 0 : index
    %3 = vector.load %arg3[%c0_3, %c0_4] : memref<1x128xf32, #tpu.memory_space<vmem>>, vector<1x128xf32>
    %4 = vector.broadcast %3 : vector<1x128xf32> to vector<8x128xf32>
    %5 = arith.addf %2, %4 : vector<8x128xf32>
    %cst_5 = arith.constant 0.000000e+00 : f32
    %6 = vector.broadcast %cst_5 : f32 to vector<8x128xf32>
    %7 = arith.maximumf %5, %6 : vector<8x128xf32>
    %c0_6 = arith.constant 0 : index
    %c0_7 = arith.constant 0 : index
    %8 = vector.load %arg4[%c0_6, %c0_7] : memref<8x128xbf16, #tpu.memory_space<vmem>>, vector<8x128xbf16>
    %9 = arith.truncf %7 : vector<8x128xf32> to vector<8x128xbf16>
    %cst_8 = arith.constant dense<0.000000e+00> : vector<8x8xf32>
    %10 = tpu.matmul %8, %9, %cst_8 {dimension_numbers = #tpu.dot_dimension_numbers<[1], [1], [0], [0], [0, 0, 1, 0], [], []>} : vector<8x128xbf16>, vector<8x128xbf16>, vector<8x8xf32> -> vector<8x8xf32>
    %c0_9 = arith.constant 0 : index
    %c0_10 = arith.constant 0 : index
    %11 = vector.load %arg5[%c0_9, %c0_10] : memref<8x1xf32, #tpu.memory_space<vmem>>, vector<8x1xf32>
    %12 = vector.broadcast %11 : vector<8x1xf32> to vector<8x8xf32>
    %13 = arith.addf %10, %12 : vector<8x8xf32>
    %c0_11 = arith.constant 0 : index
    %c0_12 = arith.constant 0 : index
    %14 = vector.load %arg6[%c0_11, %c0_12] : memref<8x8xf32, #tpu.memory_space<vmem>>, vector<8x8xf32>
    tpu.vector_store %arg6[%c0_11, %c0_12], %13 {strides = array<i32>} : memref<8x8xf32, #tpu.memory_space<vmem>>, vector<8x8xf32>,
    return
  }
  func.func @transform_0(%arg0: i32) -> (i32, i32) {
    %c0_i32 = arith.constant 0 : i32
    %c0_i32_0 = arith.constant 0 : i32
    return %arg0, %c0_i32 : i32, i32
  }
  func.func @transform_1(%arg0: i32) -> (i32, i32) {
    %c0_i32 = arith.constant 0 : i32
    %c0_i32_0 = arith.constant 0 : i32
    %c0_i32_1 = arith.constant 0 : i32
    return %c0_i32, %c0_i32_0 : i32, i32
  }
  func.func @transform_2(%arg0: i32) -> (i32, i32) {
    %c0_i32 = arith.constant 0 : i32
    %c0_i32_0 = arith.constant 0 : i32
    %c0_i32_1 = arith.constant 0 : i32
    return %c0_i32, %c0_i32_0 : i32, i32
  }
  func.func @transform_3(%arg0: i32) -> (i32, i32) {
    %c0_i32 = arith.constant 0 : i32
    %c0_i32_0 = arith.constant 0 : i32
    %c0_i32_1 = arith.constant 0 : i32
    return %c0_i32, %c0_i32_0 : i32, i32
  }
  func.func @transform_4(%arg0: i32) -> (i32, i32) {
    %c0_i32 = arith.constant 0 : i32
    %c0_i32_0 = arith.constant 0 : i32
    %c0_i32_1 = arith.constant 0 : i32
    return %c0_i32, %c0_i32_0 : i32, i32
  }
  func.func @transform_5(%arg0: i32) -> (i32, i32) {
    %c0_i32 = arith.constant 0 : i32
    %c0_i32_0 = arith.constant 0 : i32
    return %c0_i32, %arg0 : i32, i32
  }
}

</mosaic_0001>

<bundles_post_ra>
// kernel: tpu_custom_call.1
= control target key start
LH: loop header
LB: loop body
LE: loop exit
PB: predicated region body
PF: predicated region fallthrough
CT: control target
= control target key end

     0   :  { %10 = vsyncpa [#allocation3], 0  ;;  %s770_s0 = inlined_call_operand.hbm [shape: bf16[8,512], index: 0, kind: input, shape index: {}]   ;;  %s771_s1 = inlined_call_operand.hbm [shape: bf16[512,128], index: 1, kind: input, shape index: {}]   ;;  %s772_s2 = inlined_call_operand.vmem [shape: f32[1,128], index: 2, kind: input, shape index: {}]   ;;  %s773_s3 = inlined_call_operand.vmem [shape: bf16[8,128], index: 3, kind: input, shape index: {}]   ;;  %s774_s4 = inlined_call_operand.vmem [shape: f32[8,1], index: 4, kind: input, shape index: {}]   ;;  %s775_s5 = inlined_call_operand.hbm [shape: f32[8,8], index: 5, kind: output, shape index: {}]  }
   0x1   :  { %11 = vsyncpa [#allocation6], 0 }
   0x2   :  { %12 = vsyncpa [#allocation4], 0  ;;  %s680_s18 = smov [#allocation2]   ;;  %s681_s20 = smov [#allocation5]  }
   0x3   :  { %s19_s19 = sshll.u32 %s680_s18, 4  ;;  %s28_s21 = sshll.u32 %s681_s20, 4  ;;  %s20_s19 = int_to_ptr.vmem [resolvable:$true] %s19_s19  ;;  %s718_s21 = int_to_ptr.vmem [resolvable:$true] %s28_s21 }
   0x4   :  { %s608_s24 = scalar_lea.hbm %s770_s0, 256 }
   0x5   :  { %p609_p0 = scmp.ne.s32.totalorder %s770_s0, %s608_s24  ;;  %p612_p1 = scmp.lt.u32.totalorder %s608_s24, %s770_s0 }
   0x7   :  { %p614_p2 = pnand %p612_p1, %p609_p0 }
   0x9   :  { %617 = shalt.err (!%p614_p2)
}
   0xa   :  { %s618_s29 = scalar_lea.vmem %s20_s19, 256  ;;  %p623_p4 = scmp.lt.s32.totalorder %s20_s19, %s20_s19 }
   0xb   :  { %p619_p3 = scmp.ne.s32.totalorder %s20_s19, %s618_s29  ;;  %p624_p5 = scmp.lt.s32.totalorder %s618_s29, %s618_s29 }
   0xd   :  { %p625_p6 = por %p624_p5, %p623_p4 }
   0xf   :  { %p626_p7 = pnand %p625_p6, %p619_p3 }
  0x11   :  { %629 = shalt.err (!%p626_p7)
}
  0x12   :  { %22 = dma.hbm_to_vmem [thread:$0]  %s770_s0, 256, %s20_s19, [#allocation3]  }
  0x13   :  { %s630_s9 = scalar_lea.hbm %s771_s1, 4096 }
  0x14   :  { %p631_p8 = scmp.ne.s32.totalorder %s771_s1, %s630_s9  ;;  %p634_p9 = scmp.lt.u32.totalorder %s630_s9, %s771_s1 }
  0x16   :  { %p636_p10 = pnand %p634_p9, %p631_p8 }
  0x18   :  { %639 = shalt.err (!%p636_p10)
}
  0x19   :  { %s640_s14 = scalar_lea.vmem %s718_s21, 4096  ;;  %p645_p12 = scmp.lt.s32.totalorder %s718_s21, %s718_s21 }
  0x1a   :  { %p641_p11 = scmp.ne.s32.totalorder %s718_s21, %s640_s14  ;;  %p646_p13 = scmp.lt.s32.totalorder %s640_s14, %s640_s14 }
  0x1c   :  { %p647_p0 = por %p646_p13, %p645_p12 }
  0x1e   :  { %p648_p1 = pnand %p647_p0, %p641_p11 }
  0x20   :  { %651 = shalt.err (!%p648_p1)
}
  0x21   :  { %s682_s0 = smov 64   ;;  %s683_s15 = smov 4  }
  0x22   :  { %34 = dma.hbm_to_vmem [thread:$0]  %s771_s1, 4096, %s718_s21, [#allocation6], %s682_s0, %s682_s0, %s683_s15  }
  0x23   :  { %674 = dma.done.wait [#allocation3], 256  }
  0x24   :  { %675 = vsyncadd [#allocation3], 4294967040 }
  0x25   :  { %676 = dma.done.wait [#allocation6], 4096  }
  0x26   :  { %677 = vsyncadd [#allocation6], 4294963200  ;;  %v572_v0 = vld [vmem:[#allocation5 + $0x40] sm:$0xff]   ;;  %v576_v4 = vld [vmem:[#allocation5 + $0x48] sm:$0xff]   ;;  %v684_v38 = vmov 0.0   ;;  %vm685_vm0 = vmmov 0  }
  0x27   :  { %v573_v1 = vld [vmem:[#allocation5 + $0xc0] sm:$0xff]   ;;  %511 = vmatprep.subr.bf16.mxu0 %v572_v0  ;;  %v577_v5 = vld [vmem:[#allocation5 + $0xc8] sm:$0xff]   ;;  %v580_v8 = vld [vmem:[#allocation5 + $0x50] sm:$0xff]   ;;  %v686_v40 = vmov 0   ;;  %vm456_vm1 = vcmask 64512  }
  0x28   :  { %v574_v2 = vld [vmem:[#allocation5] sm:$0xff]   ;;  %533 = vmatprep.subr.bf16.mxu1 %v573_v1  ;;  %v578_v6 = vld [vmem:[#allocation5 + $0x8] sm:$0xff]   ;;  %v581_v9 = vld [vmem:[#allocation5 + $0xd0] sm:$0xff]   ;;  %571 = vset.pattern.permute.xlu0 %v686_v40 }
  0x29   :  { %v575_v3 = vld [vmem:[#allocation5 + $0x80] sm:$0xff]   ;;  %512 = vmatpush3.bf16.msra.mxu0 %v574_v2  ;;  %v579_v7 = vld [vmem:[#allocation5 + $0x88] sm:$0xff]   ;;  %v582_v10 = vld [vmem:[#allocation5 + $0x10] sm:$0xff]  }
  0x2a   :  { %534 = vmatpush3.bf16.msra.mxu1 %v575_v3  ;;  %513 = vmatprep.subr.bf16.mxu0 %v576_v4  ;;  %v583_v11 = vld [vmem:[#allocation5 + $0x90] sm:$0xff]   ;;  %v584_v12 = vld [vmem:[#allocation5 + $0x58] sm:$0xff]   ;;  %v588_v16 = vld [vmem:[#allocation5 + $0x60] sm:$0xff]  }
  0x2b   :  { %535 = vmatprep.subr.bf16.mxu1 %v577_v5  ;;  %v585_v13 = vld [vmem:[#allocation5 + $0xd8] sm:$0xff]   ;;  %v589_v17 = vld [vmem:[#allocation5 + $0xe0] sm:$0xff]   ;;  %v592_v20 = vld [vmem:[#allocation5 + $0x68] sm:$0xff]  }
  0x2c   :  { %v586_v14 = vld [vmem:[#allocation5 + $0x18] sm:$0xff]   ;;  %v590_v18 = vld [vmem:[#allocation5 + $0x20] sm:$0xff]   ;;  %v593_v21 = vld [vmem:[#allocation5 + $0xe8] sm:$0xff]  }
  0x2d   :  { %514 = vmatpush3.bf16.msra.mxu0 %v578_v6  ;;  %v587_v15 = vld [vmem:[#allocation5 + $0x98] sm:$0xff]   ;;  %v591_v19 = vld [vmem:[#allocation5 + $0xa0] sm:$0xff]   ;;  %v594_v22 = vld [vmem:[#allocation5 + $0x28] sm:$0xff]  }
  0x2e   :  { %536 = vmatpush3.bf16.msra.mxu1 %v579_v7  ;;  %515 = vmatprep.subr.bf16.mxu0 %v580_v8  ;;  %v595_v23 = vld [vmem:[#allocation5 + $0xa8] sm:$0xff]   ;;  %v596_v24 = vld [vmem:[#allocation5 + $0x70] sm:$0xff]   ;;  %v600_v28 = vld [vmem:[#allocation5 + $0x78] sm:$0xff]  }
  0x2f   :  { %537 = vmatprep.subr.bf16.mxu1 %v581_v9  ;;  %v597_v25 = vld [vmem:[#allocation5 + $0xf0] sm:$0xff]   ;;  %v601_v29 = vld [vmem:[#allocation5 + $0xf8] sm:$0xff]  }
  0x30   :  { %v598_v26 = vld [vmem:[#allocation5 + $0x30] sm:$0xff]   ;;  %v602_v30 = vld [vmem:[#allocation5 + $0x38] sm:$0xff]  }
  0x31   :  { %516 = vmatpush3.bf16.msra.mxu0 %v582_v10  ;;  %v599_v27 = vld [vmem:[#allocation5 + $0xb0] sm:$0xff]   ;;  %v603_v31 = vld [vmem:[#allocation5 + $0xb8] sm:$0xff]  }
  0x32   :  { %538 = vmatpush3.bf16.msra.mxu1 %v583_v11  ;;  %517 = vmatprep.subr.bf16.mxu0 %v584_v12  ;;  %v48_v32 = vld [vmem:[#allocation2] sm:$0xff]  ;;  %v49_v33 = vld [vmem:[#allocation2 + $0x8] sm:$0xff] }
  0x33   :  { %539 = vmatprep.subr.bf16.mxu1 %v585_v13  ;;  %v475_v34 = vcombine.low %v48_v32, %v48_v32  ;;  %v476_v35 = vcombine.high %v48_v32, %v48_v32  ;;  %v477_v36 = vcombine.low %v49_v33, %v49_v33  ;;  %v478_v37 = vcombine.high %v49_v33, %v49_v33  ;;  %v410_v39 = vld [vmem:[%s774_s4] sm:$0xff] }
  0x34   :  { %413 = vperm.xlu0 %571, %v410_v39   ;;  %v474_v43 = vld [vmem:[%s772_s2] ss:$0 sm:$0xff]  ;;  %s687_s2 = smov [#allocation7]  }
  0x35   :  { %518 = vmatpush3.bf16.msra.mxu0 %v586_v14  ;;  %359 = vmatprep.mubr.bf16.mxu0 %v476_v35  ;;  %v408_v56 = vld [vmem:[%s773_s3] sm:$0xf]  ;;  %s464_s22 = sshll.u32 %s687_s2, 4  ;;  %s465_s22 = int_to_ptr.vmem [resolvable:$true] %s464_s22 }
  0x36   :  { %540 = vmatpush3.bf16.msra.mxu1 %v587_v15  ;;  %519 = vmatprep.subr.bf16.mxu0 %v588_v16  ;;  %s652_s23 = scalar_lea.vmem %s465_s22, 128  ;;  %p657_p3 = scmp.lt.s32.totalorder %s465_s22, %s465_s22 }
  0x37   :  { %541 = vmatprep.subr.bf16.mxu1 %v589_v17  ;;  %399 = vmatprep.mubr.bf16.mxu1 %v478_v37  ;;  %p653_p2 = scmp.ne.s32.totalorder %s465_s22, %s652_s23  ;;  %p658_p4 = scmp.lt.s32.totalorder %s652_s23, %s652_s23 }
  0x39   :  { %520 = vmatpush3.bf16.msra.mxu0 %v590_v18  ;;  %p659_p5 = por %p658_p4, %p657_p3 }
  0x3a   :  { %542 = vmatpush3.bf16.msra.mxu1 %v591_v19  ;;  %521 = vmatprep.subr.bf16.mxu0 %v592_v20 }
  0x3b   :  { %543 = vmatprep.subr.bf16.mxu1 %v593_v21  ;;  %p660_p6 = pnand %p659_p5, %p653_p2 }
  0x3d   :  { %522 = vmatpush3.bf16.msra.mxu0 %v594_v22 }
  0x3e   :  { %544 = vmatpush3.bf16.msra.mxu1 %v595_v23  ;;  %523 = vmatprep.subr.bf16.mxu0 %v596_v24 }
  0x3f   :  { %545 = vmatprep.subr.bf16.mxu1 %v597_v25 }
  0x41   :  { %524 = vmatpush3.bf16.msra.mxu0 %v598_v26 }
  0x42   :  { %546 = vmatpush3.bf16.msra.mxu1 %v599_v27  ;;  %525 = vmatprep.subr.bf16.mxu0 %v600_v28 }
  0x43   :  { %547 = vmatprep.subr.bf16.mxu1 %v601_v29 }
  0x45   :  { %526 = vmatpush3.bf16.msra.mxu0 %v602_v30 }
  0x46   :  { %548 = vmatpush3.bf16.msra.mxu1 %v603_v31  ;;  %557 = vmatprep.subr.bf16.mxu0 %v684_v38 }
  0x48   :  { %360 = vmatmul.mubr.bf16.vlgmr.msra.gmra.mrb[0].mxu0 %v475_v34 }
  0x49   :  { %400 = vmatmul.mubr.bf16.vlgmr.msra.gmra.mrb[0].mxu1 %v477_v36  ;;  %559 = vmatprep.mubr.msk.bf16.mxu0 %vm685_vm0, %v684_v38 }
  0xb3   :  { %v414_v57 = vpop.permute.xlu0 %413 }
 0x11b   :  { %v527_v41 = vpop.f32.mrb[0].mxu0 }
 0x11c   :  { %v549_v42 = vpop.f32.mrb[0].mxu1  ;;  %v528_v44 = vpop.f32.mrb[1].mxu0 }
 0x11d   :  { %v550_v45 = vpop.f32.mrb[1].mxu1  ;;  %v529_v46 = vadd.f32 %v528_v44, %v527_v41  ;;  %v530_v48 = vpop.f32.mrb[2].mxu0 }
 0x11e   :  { %v551_v47 = vadd.f32 %v550_v45, %v549_v42  ;;  %v552_v49 = vpop.f32.mrb[2].mxu1  ;;  %v531_v50 = vpop.f32.mrb[3].mxu0 }
 0x11f   :  { %v553_v51 = vpop.f32.mrb[3].mxu1  ;;  %v362_v52 = vadd.f32 %v529_v46, %v474_v43 }
 0x121   :  { %v402_v53 = vadd.f32 %v551_v47, %v362_v52 }
 0x123   :  { %v407_v54 = vmax.f32 %v402_v53, 0.0 }
 0x125   :  { %v409_v55 = vpack.c.bf16 %v407_v54, %v407_v54 }
 0x127   :  { %558 = vmatpush3.bf16.xpose.msra.mxu0 %v409_v55 }
 0x12e   :  { %560 = vmatmul.mubr.bf16.vlgmr.msra.gmra.mrb[4].mxu0 %v408_v56 }
 0x201   :  { %v450_v58 = vpop.f32.mrb[4].mxu0 }
 0x202   :  { %v451_v59 = vadd.f32 %v450_v58, %v414_v57  ;;  %v561_v60 = vpop.f32.mrb[5].mxu0 }
 0x203   :  { %v453_v61 = vpop.f32.mrb[6].mxu0 }
 0x204   :  { %v562_v62 = vpop.f32.mrb[7].mxu0  ;;  %457 = vst.msk [vmem:[#allocation7] sm:$0xff] %vm456_vm1, %v451_v59 }
 0x205   :  { %663 = shalt.err (!%p660_p6)
}
 0x206   :  { %s664_s25 = scalar_lea.hbm %s775_s5, 128 }
 0x207   :  { %p665_p7 = scmp.ne.s32.totalorder %s775_s5, %s664_s25  ;;  %p668_p8 = scmp.lt.u32.totalorder %s664_s25, %s775_s5 }
 0x209   :  { %p670_p9 = pnand %p668_p8, %p665_p7 }
 0x20b   :  { %673 = shalt.err (!%p670_p9)
}
 0x20c   :  { %467 = dma.vmem_to_hbm [thread:$0]  %s465_s22, 128, %s775_s5, [#allocation4]  }
 0x20d   :  { %678 = dma.done.wait [#allocation4], 128  }
 0x20e   :  { %679 = vsyncadd [#allocation4], 4294967168 }
 0x20f   :  { %471 = vsyncpa [#allocation3], 1 }
 0x210   :  { %472 = vsyncpa [#allocation6], 1 }
 0x211   :  { %473 = vsyncpa [#allocation4], 1 }

</bundles_post_ra>
